<compile_context>
chip_gen: v5e
topology: v5e:2x2
jax: 0.10.0
libtpu: 0.0.40
codegen_flags: <defaults>
</compile_context>

<pallas_src>
import jax
import jax.numpy as jnp
from jax.experimental import pallas as pl
from jax.experimental.pallas import tpu as pltpu

_LANES = 128
_SMALL_ROWS = 1024                      # <= 128K elems -> single-block path
_MiB = 1024 * 1024


def _cdiv(a, b):
    return (a + b - 1) // b


def _round_up(x, m):
    return ((x + m - 1) // m) * m


def _round_down(x, m):
    return (x // m) * m


def _device_kind():
    try:
        return jax.devices()[0].device_kind.lower()
    except Exception:
        return ""


def _num_parallel_for(kind):
    # v7x: 2 TensorCores per device -> shard the leading grid axis.
    # v5e / v6e: 1 TC -> a >1 "parallel" axis is just a serial outer loop.
    return 2 if "v7" in kind else 1


def _vmem_budget_for(kind):
    if "v5" in kind:
        return 12 * _MiB     # 16 MiB scoped default on v5e
    if "v7" in kind:
        return 24 * _MiB     # 32 MiB scoped default, only 64 MiB physical
    if "v6" in kind:
        return 26 * _MiB     # 32 MiB scoped default, 128 MiB physical
    return 12 * _MiB         # conservative fallback


def _flatten_pad_2d(x, rows, neutral):
    """(small path only) flatten + pad with a hinge-neutral value to (rows, 128)."""
    flat = x.reshape(-1)
    pad = rows * _LANES - flat.shape[0]
    if pad > 0:
        flat = jnp.concatenate(
            [flat, jnp.full((pad,), neutral, dtype=flat.dtype)])
    return flat.reshape(rows, _LANES)


def _main_slab(x, sign):
    """Copy-light (rows, 128) view of x plus a JAX-side hinge sum of the tail.

    hinge(x) = relu(1 - sign * x);  x == sign is hinge-neutral (contributes 0).
    Returns (slab_2d, valid_rows, tail_hinge_sum).
    """
    flat = x.reshape(-1)                       # free for contiguous inputs
    n = flat.shape[0]
    rows = n // _LANES
    if rows * _LANES < n:
        tail = flat[rows * _LANES:].astype(jnp.float32)
        tail_sum = jnp.sum(jnp.maximum(1.0 - sign * tail, 0.0))
    else:
        tail_sum = jnp.float32(0.0)
    if rows == 0:
        # Degenerate: fewer than 128 elements -> neutral filler slab (adds 0).
        slab = jnp.full((8, _LANES), sign, dtype=x.dtype)
        rows = 8
    else:
        slab = flat[: rows * _LANES].reshape(rows, _LANES)
    return slab, rows, tail_sum


# ----------------------------- kernels --------------------------------------
def _make_single_block_kernel(weight, inv_pos, inv_neg):
    def kernel(pos_ref, neg_ref, out_ref):
        pos = pos_ref[...].astype(jnp.float32)
        neg = neg_ref[...].astype(jnp.float32)
        s_pos = jnp.sum(jnp.maximum(1.0 - pos, 0.0))
        s_neg = jnp.sum(jnp.maximum(1.0 + neg, 0.0))
        out_ref[0, 0] = weight * (s_pos * inv_pos + s_neg * inv_neg)
    return kernel


def _make_tiled_kernel(row_tile, blocks_per_part, rows_pos, rows_neg,
                       full_blocks, total_steps):
    """Streams (row_tile, 128) blocks; accumulates (8, 128) partial sums."""

    def kernel(pos_ref, neg_ref, out_ref, acc_p_ref, acc_n_ref):
        p = pl.program_id(0)              # parallel axis (TensorCores on v7x)
        j = pl.program_id(1)              # reduction axis ("arbitrary")
        blk = p * blocks_per_part + j     # logical (unclamped) block index

        @pl.when(j == 0)
        def _():
            acc_p_ref[...] = jnp.zeros_like(acc_p_ref)
            acc_n_ref[...] = jnp.zeros_like(acc_n_ref)

        def accumulate(masked):
            pos = pos_ref[...].astype(jnp.float32)
            neg = neg_ref[...].astype(jnp.float32)
            hp = jnp.maximum(1.0 - pos, 0.0)
            hn = jnp.maximum(1.0 + neg, 0.0)
            if masked:
                # Row mask against the true row counts: covers the ragged tail
                # of the last real block AND fully out-of-range (clamped)
                # excess blocks of the parallel split.
                rid = (jax.lax.broadcasted_iota(jnp.int32, (row_tile, _LANES), 0)
                       + blk * row_tile)
                hp = jnp.where(rid < rows_pos, hp, 0.0)
                hn = jnp.where(rid < rows_neg, hn, 0.0)
            # In-vreg partial reduction into a 1-vreg accumulator: pure VALU
            # adds over vreg-aligned (8,128) sub-tiles -> no extra vst traffic.
            acc_p_ref[...] += hp.reshape(row_tile // 8, 8, _LANES).sum(axis=0)
            acc_n_ref[...] += hn.reshape(row_tile // 8, 8, _LANES).sum(axis=0)

        if total_steps <= full_blocks:
            accumulate(False)             # statically no ragged edge anywhere
        else:
            pl.when(blk < full_blocks)(lambda: accumulate(False))
            pl.when(blk >= full_blocks)(lambda: accumulate(True))

        @pl.when(j == pl.num_programs(1) - 1)
        def _():
            # One tiny epilogue XLU reduce per parallel slot.
            out_ref[0, 0, 0] = jnp.sum(acc_p_ref[...])
            out_ref[0, 0, 1] = jnp.sum(acc_n_ref[...])

    return kernel


# ----------------------------- wrapper ---------------------------------------
def sndis_loss(pos, neg, weight=1.0, row_tile=None, num_parallel=None):
    """weight * (mean(relu(1 - pos)) + mean(relu(1 + neg))) via Pallas."""
    n_pos = int(pos.size)
    n_neg = int(neg.size)
    w = float(weight)
    inv_pos = 1.0 / float(n_pos)
    inv_neg = 1.0 / float(n_neg)

    rows_max_ceil = max(_cdiv(n_pos, _LANES), _cdiv(n_neg, _LANES))

    # ----------------- small path: one block, no pipeline machinery ---------
    if rows_max_ceil <= _SMALL_ROWS:
        rows = max(8, _round_up(rows_max_ceil, 8))
        pos2d = _flatten_pad_2d(pos, rows, 1.0)     # relu(1 - 1)  == 0
        neg2d = _flatten_pad_2d(neg, rows, -1.0)    # relu(1 + -1) == 0
        out = pl.pallas_call(
            _make_single_block_kernel(w, inv_pos, inv_neg),
            out_shape=jax.ShapeDtypeStruct((1, 1), jnp.float32),
            grid_spec=pltpu.PrefetchScalarGridSpec(
                num_scalar_prefetch=0,
                grid=(1,),
                in_specs=[
                    pl.BlockSpec((rows, _LANES), lambda i: (0, 0)),
                    pl.BlockSpec((rows, _LANES), lambda i: (0, 0)),
                ],
                out_specs=pl.BlockSpec((1, 1), lambda i: (0, 0),
                                       memory_space=pltpu.SMEM),
            ),
            compiler_params=pltpu.CompilerParams(
                dimension_semantics=("arbitrary",)),
        )(pos2d, neg2d)
        return out[0, 0]

    # ----------------- tiled path: big blocks + (8,128) accumulators --------
    kind = _device_kind()
    if num_parallel is None:
        num_parallel = _num_parallel_for(kind)
    num_parallel = max(1, int(num_parallel))

    itemsize = max(jnp.dtype(pos.dtype).itemsize, jnp.dtype(neg.dtype).itemsize)
    align = 8 * max(1, 4 // int(itemsize))          # 8 f32, 16 bf16, 32 int8

    budget = _vmem_budget_for(kind)
    # bytes/row in flight: 2 inputs x 2 pipeline buffers (accumulators: 8 KiB).
    bytes_per_row = _LANES * 2 * 2 * int(itemsize)
    max_rt = max(align, _round_down(budget // bytes_per_row, align))
    rt = 4096 if row_tile is None else int(row_tile)
    rt = max(align, min(rt, max_rt))
    # Don't exceed what one parallel slot actually needs (medium inputs).
    rt = min(rt, _round_up(_cdiv(rows_max_ceil, num_parallel), align))
    rt = max(align, _round_down(rt, align))

    # Copy-light 2-D slabs (no concatenate padding); ragged tails -> JAX sums.
    pos2d, rows_p, pos_tail = _main_slab(pos, 1.0)
    neg2d, rows_n, neg_tail = _main_slab(neg, -1.0)

    blocks_total = _cdiv(max(rows_p, rows_n), rt)
    blocks_per_part = _cdiv(blocks_total, num_parallel)
    total_steps = num_parallel * blocks_per_part
    full_blocks = min(rows_p, rows_n) // rt         # blocks needing no mask
    blocks_p = max(1, _cdiv(rows_p, rt))
    blocks_n = max(1, _cdiv(rows_n, rt))

    def make_in_map(nblk):
        last = nblk - 1

        def idx(p, j):
            # Clamp so the DMA never goes out of bounds; clamped (excess)
            # blocks are fully masked in-kernel and contribute zero.
            return (jnp.minimum(p * blocks_per_part + j, last), 0)
        return idx

    partials = pl.pallas_call(
        _make_tiled_kernel(rt, blocks_per_part, rows_p, rows_n,
                           full_blocks, total_steps),
        out_shape=jax.ShapeDtypeStruct((num_parallel, 1, 2), jnp.float32),
        grid_spec=pltpu.PrefetchScalarGridSpec(
            num_scalar_prefetch=0,
            grid=(num_parallel, blocks_per_part),
            in_specs=[
                pl.BlockSpec((rt, _LANES), make_in_map(blocks_p)),
                pl.BlockSpec((rt, _LANES), make_in_map(blocks_n)),
            ],
            out_specs=pl.BlockSpec((1, 1, 2), lambda p, j: (p, 0, 0),
                                   memory_space=pltpu.SMEM),
            scratch_shapes=[
                pltpu.VMEM((8, _LANES), jnp.float32),
                pltpu.VMEM((8, _LANES), jnp.float32),
            ],
        ),
        compiler_params=pltpu.CompilerParams(
            dimension_semantics=("parallel", "arbitrary")),
    )(pos2d, neg2d)

    total = jnp.sum(partials, axis=(0, 1))          # (2,) f32 partial sums
    pos_sum = total[0] + pos_tail
    neg_sum = total[1] + neg_tail
    return w * (pos_sum * inv_pos + neg_sum * inv_neg)


if __name__ == "__main__":
    key = jax.random.PRNGKey(0)
    kp, kn, kp2, kn2, kp3, kn3 = jax.random.split(key, 6)

    weight = 1.0  # module default

    def ref_loss(p, n):
        return weight * (jnp.mean(jnp.maximum(1.0 - p, 0.0))
                         + jnp.mean(jnp.maximum(1.0 + n, 0.0)))

    # 1) Module-typical small discriminator logits (NCHW) -> single-block path.
    pos = jax.random.normal(kp, (2, 4, 16, 16), dtype=jnp.float32)
    neg = jax.random.normal(kn, (2, 4, 16, 16), dtype=jnp.float32)
    loss = jax.block_until_ready(sndis_loss(pos, neg, weight=weight))
    ref = ref_loss(pos, neg)
    assert jnp.allclose(loss, ref, rtol=1e-6, atol=1e-6), (loss, ref)

    # 2) Large, lane-aligned logits -> tiled path, no masking / no tail.
    pos2 = jax.random.normal(kp2, (4, 4, 256, 256), dtype=jnp.float32)
    neg2 = jax.random.normal(kn2, (4, 4, 256, 256), dtype=jnp.float32)
    loss2 = jax.block_until_ready(sndis_loss(pos2, neg2, weight=weight))
    ref2 = ref_loss(pos2, neg2)
    assert jnp.allclose(loss2, ref2, rtol=1e-5, atol=1e-6), (loss2, ref2)

    # 3) Ragged size (not a multiple of 128) -> tiled path with in-kernel row
    #    masking + tiny JAX-side tail sum (no concatenate padding anywhere).
    pos3 = jax.random.normal(kp3, (1, 3, 311, 229), dtype=jnp.float32)
    neg3 = jax.random.normal(kn3, (1, 3, 311, 229), dtype=jnp.float32)
    loss3 = jax.block_until_ready(sndis_loss(pos3, neg3, weight=weight))
    ref3 = ref_loss(pos3, neg3)
    assert jnp.allclose(loss3, ref3, rtol=1e-5, atol=1e-6), (loss3, ref3)

    print("KERNEL_OK")
</pallas_src>

<mosaic_0001>
module attributes {stable_mosaic.version = 11 : i64} {
  func.func @kernel(%arg0: i32, %arg1: memref<16x128xf32, #tpu.memory_space<vmem>>, %arg2: memref<16x128xf32, #tpu.memory_space<vmem>>, %arg3: memref<1x1xf32, #tpu.memory_space<smem>>) attributes {dimension_semantics = [#tpu.dimension_semantics<arbitrary>], iteration_bounds = array<i64: 1>, scalar_prefetch = 0 : i64, scratch_operands = 0 : i64, tpu.core_type = #tpu.core_type<tc>, window_params = [{pipeline_mode = #tpu.pipeline_mode<synchronous>, transform_indices = @transform_0, window_bounds = array<i64: 16, 128>}, {pipeline_mode = #tpu.pipeline_mode<synchronous>, transform_indices = @transform_1, window_bounds = array<i64: 16, 128>}, {transform_indices = @transform_2, window_bounds = array<i64: 1, 1>}]} {
    %c0 = arith.constant 0 : index
    %c0_0 = arith.constant 0 : index
    %0 = vector.load %arg1[%c0, %c0_0] : memref<16x128xf32, #tpu.memory_space<vmem>>, vector<16x128xf32>
    %c0_1 = arith.constant 0 : index
    %c0_2 = arith.constant 0 : index
    %1 = vector.load %arg2[%c0_1, %c0_2] : memref<16x128xf32, #tpu.memory_space<vmem>>, vector<16x128xf32>
    %cst = arith.constant 1.000000e+00 : f32
    %2 = vector.broadcast %cst : f32 to vector<16x128xf32>
    %3 = arith.subf %2, %0 : vector<16x128xf32>
    %cst_3 = arith.constant 0.000000e+00 : f32
    %4 = vector.broadcast %cst_3 : f32 to vector<16x128xf32>
    %5 = arith.maximumf %3, %4 : vector<16x128xf32>
    %6 = vector.shape_cast %5 : vector<16x128xf32> to vector<1x16x128xf32>
    %cst_4 = arith.constant dense<0.000000e+00> : vector<1xf32>
    %7 = vector.multi_reduction <add>, %6, %cst_4 [1, 2] : vector<1x16x128xf32> to vector<1xf32>
    %8 = vector.shape_cast %7 : vector<1xf32> to vector<1x1x1xf32>
    %9 = vector.extract %8[0, 0, 0] : f32 from vector<1x1x1xf32>
    %cst_5 = arith.constant 1.000000e+00 : f32
    %10 = vector.broadcast %cst_5 : f32 to vector<16x128xf32>
    %11 = arith.addf %10, %1 : vector<16x128xf32>
    %cst_6 = arith.constant 0.000000e+00 : f32
    %12 = vector.broadcast %cst_6 : f32 to vector<16x128xf32>
    %13 = arith.maximumf %11, %12 : vector<16x128xf32>
    %14 = vector.shape_cast %13 : vector<16x128xf32> to vector<1x16x128xf32>
    %cst_7 = arith.constant dense<0.000000e+00> : vector<1xf32>
    %15 = vector.multi_reduction <add>, %14, %cst_7 [1, 2] : vector<1x16x128xf32> to vector<1xf32>
    %16 = vector.shape_cast %15 : vector<1xf32> to vector<1x1x1xf32>
    %17 = vector.extract %16[0, 0, 0] : f32 from vector<1x1x1xf32>
    %cst_8 = arith.constant 4.8828125E-4 : f32
    %18 = arith.mulf %9, %cst_8 : f32
    %cst_9 = arith.constant 4.8828125E-4 : f32
    %19 = arith.mulf %17, %cst_9 : f32
    %20 = arith.addf %18, %19 : f32
    %cst_10 = arith.constant 1.000000e+00 : f32
    %21 = arith.mulf %cst_10, %20 : f32
    %c0_11 = arith.constant 0 : index
    %c0_12 = arith.constant 0 : index
    %22 = memref.load %arg3[%c0_11, %c0_12] : memref<1x1xf32, #tpu.memory_space<smem>>
    memref.store %21, %arg3[%c0_11, %c0_12] : memref<1x1xf32, #tpu.memory_space<smem>>
    return
  }
  func.func @transform_0(%arg0: i32) -> (i32, i32) {
    %c0_i32 = arith.constant 0 : i32
    %c0_i32_0 = arith.constant 0 : i32
    %c0_i32_1 = arith.constant 0 : i32
    return %c0_i32, %c0_i32_0 : i32, i32
  }
  func.func @transform_1(%arg0: i32) -> (i32, i32) {
    %c0_i32 = arith.constant 0 : i32
    %c0_i32_0 = arith.constant 0 : i32
    %c0_i32_1 = arith.constant 0 : i32
    return %c0_i32, %c0_i32_0 : i32, i32
  }
  func.func @transform_2(%arg0: i32) -> (i32, i32) {
    %c0_i32 = arith.constant 0 : i32
    %c0_i32_0 = arith.constant 0 : i32
    %c0_i32_1 = arith.constant 0 : i32
    return %c0_i32, %c0_i32_0 : i32, i32
  }
}

</mosaic_0001>

<bundles_post_ra>
// kernel: tpu_custom_call.1
= control target key start
LH: loop header
LB: loop body
LE: loop exit
PB: predicated region body
PF: predicated region fallthrough
CT: control target
= control target key end

     0   :  { %7 = vsyncpa [#allocation3], 0  ;;  %s202_s0 = inlined_call_operand.hbm [shape: f32[16,128], index: 0, kind: input, shape index: {}]   ;;  %s203_s1 = inlined_call_operand.hbm [shape: f32[16,128], index: 1, kind: input, shape index: {}]   ;;  %s204_s2 = inlined_call_operand.hbm [shape: f32[1,1], index: 2, kind: output, shape index: {}]  }
   0x1   :  { %8 = vsyncpa [#allocation6], 0 }
   0x2   :  { %9 = vsyncpa [#allocation4], 0  ;;  %s14_s11 = sshll.u32 %s202_s0, 4  ;;  %s173_s12 = smov [#allocation2]   ;;  %s15_s11 = int_to_ptr.hbm [resolvable:$true] %s14_s11 }
   0x3   :  { %s16_s13 = sshll.u32 %s173_s12, 4  ;;  %s27_s16 = sshll.u32 %s203_s1, 4  ;;  %s17_s13 = int_to_ptr.vmem [resolvable:$true] %s16_s13  ;;  %s28_s16 = int_to_ptr.hbm [resolvable:$true] %s27_s16 }
   0x4   :  { %s174_s17 = smov 128   ;;  %s175_s18 = smov 8  }
   0x5   :  { %22 = dma.hbm_to_vmem [thread:$0]  %s15_s11, 256, %s17_s13, [#allocation3], %s174_s17, %s174_s17, %s175_s18  }
   0x6   :  { %s176_s19 = smov [#allocation5]  }
   0x7   :  { %s29_s20 = sshll.u32 %s176_s19, 4  ;;  %s30_s20 = int_to_ptr.vmem [resolvable:$true] %s29_s20 }
   0x8   :  { %35 = dma.hbm_to_vmem [thread:$0]  %s28_s16, 256, %s30_s20, [#allocation6], %s174_s17, %s174_s17, %s175_s18  }
   0x9   :  { %167 = dma.done.wait [#allocation3], 256  }
   0xa   :  { %168 = vsyncadd [#allocation3], 4294967040 }
   0xb   :  { %169 = dma.done.wait [#allocation6], 256  }
   0xc   :  { %170 = vsyncadd [#allocation6], 4294967040  ;;  %v44_v0 = vld [vmem:[#allocation2] sm:$0xff]  ;;  %v45_v1 = vld [vmem:[#allocation2 + $0x8] sm:$0xff]  ;;  %s86_s22 = sshll.u32 %s204_s2, 4  ;;  %s177_s27 = smov [#allocation7]   ;;  %s87_s22 = int_to_ptr.hbm [resolvable:$true] %s86_s22 }
   0xd   :  { %v46_v2 = vld [vmem:[#allocation5] sm:$0xff]  ;;  %v48_v3 = vsub.f32 1.0, %v44_v0  ;;  %v49_v4 = vsub.f32 1.0, %v45_v1  ;;  %v47_v5 = vld [vmem:[#allocation5 + $0x8] sm:$0xff] }
   0xe   :  { %v62_v8 = vadd.f32 1.0, %v46_v2  ;;  %v63_v9 = vadd.f32 1.0, %v47_v5 }
   0xf   :  { %v50_v6 = vmax.f32 %v48_v3, 0.0  ;;  %v51_v7 = vmax.f32 %v49_v4, 0.0 }
  0x10   :  { %v64_v11 = vmax.f32 %v62_v8, 0.0  ;;  %v65_v12 = vmax.f32 %v63_v9, 0.0 }
  0x11   :  { %v52_v10 = vadd.f32 %v51_v7, %v50_v6 }
  0x12   :  { %v66_v13 = vadd.f32 %v65_v12, %v64_v11 }
  0x13   :  { %53 = vadd.xlane.f32.xlu0 %v52_v10 }
  0x1b   :  { %67 = vadd.xlane.f32.xlu0 %v66_v13 }
  0x86   :  { %v54_v14 = vpop.xlane.xlu0 %53 }
  0x87   :  { %v55_v15 = vrot.slane %v54_v14, 4 }
  0x89   :  { %v56_v16 = vadd.f32 %v55_v15, %v54_v14 }
  0x8b   :  { %v57_v17 = vrot.slane %v56_v16, 2 }
  0x8d   :  { %v58_v18 = vadd.f32 %v57_v17, %v56_v16 }
  0x8e   :  { %v68_v19 = vpop.xlane.xlu0 %67 }
  0x8f   :  { %v69_v20 = vrot.slane %v68_v19, 4  ;;  %v59_v21 = vrot.slane %v58_v18, 1 }
  0x91   :  { %v70_v22 = vadd.f32 %v69_v20, %v68_v19  ;;  %v60_v23 = vadd.f32 %v59_v21, %v58_v18 }
  0x93   :  { %v71_v24 = vrot.slane %v70_v22, 2  ;;  %98 = vpush %v60_v23 }
  0x95   :  { %v72_v25 = vadd.f32 %v71_v24, %v70_v22 }
  0x97   :  { %v73_v26 = vrot.slane %v72_v25, 1 }
  0x99   :  { %v74_v27 = vadd.f32 %v73_v26, %v72_v25 }
  0x9b   :  { %100 = vpush %v74_v27 }
  0xc4   :  { %s99_s0 = spop %98 }
  0xc5   :  { %s76_s23 = smul.f32 0.00048828125, %s99_s0 }
  0xcc   :  { %s101_s24 = spop %100 }
  0xcd   :  { %s77_s25 = smul.f32 0.00048828125, %s101_s24 }
  0xcf   :  { %s78_s26 = sadd.f32 %s77_s25, %s76_s23 }
  0xd1   :  { %80 = sst [smem:[#allocation7]] %s78_s26 }
  0xd2   :  { %89 = dma.smem_to_hbm %s177_s27, 16, %s87_s22, [#allocation4]  }
  0xd3   :  { %171 = dma.done.wait [#allocation4], 16  }
  0xd4   :  { %172 = vsyncadd [#allocation4], 4294967280 }
  0xd5   :  { %94 = sfence }
  0xd6   :  { %95 = vsyncpa [#allocation3], 1 }
  0xd7   :  { %96 = vsyncpa [#allocation6], 1 }
  0xd8   :  { %97 = vsyncpa [#allocation4], 1 }

</bundles_post_ra>
